<compile_context>
chip_gen: v7x
topology: tpu7x:2x2x1
jax: 0.10.0
libtpu: 0.0.40
codegen_flags: <defaults>
</compile_context>

<pallas_src>
from dataclasses import dataclass

import numpy as np
import jax
import jax.numpy as jnp
from jax import lax
from jax.experimental import pallas as pl
from jax.experimental.pallas import tpu as pltpu

SUB = 8               # sublanes used per coordinate channel
OUT_LANES = 128       # lane-dense per-pair output block width
TILE_W_MIN = 256      # min lane-tile width  (8*256 = 2048 match slots / tile)
TILE_W_MAX = 4096     # max lane-tile width  (block = 4*8*4096*4 B = 512 KiB)


# ----------------------------- Pallas kernel --------------------------------
def _epi_count_kernel(nvalid_ref, fmat_ref, thsq_ref, xy_ref, ngood_ref, part_ref):
    """Counts matched keypoint pairs with symmetric epipolar distance < th.

    nvalid_ref: SMEM (B,)            int32  valid (non-padded) matches per pair
    fmat_ref:   SMEM (B*18,)         f32    per pair: F12 row-major(9) ++ F21 row-major(9)
    thsq_ref:   SMEM (1,)            f32    th * th
    xy_ref:     VMEM (1,4,8,tile_w)  f32    channels = kps1.x, kps1.y, kps2.x, kps2.y
    ngood_ref:  VMEM (1,8,128)       int32  count broadcast over the block (read [...,0,0])
    part_ref:   VMEM (8,tile_w)      int32  per-lane partial counts (scratch)
    """
    p = pl.program_id(0)                 # image-pair index
    t = pl.program_id(1)                 # lane-tile index along the match axis
    tile_w = xy_ref.shape[-1]

    @pl.when(t == 0)
    def _():
        part_ref[...] = jnp.zeros_like(part_ref)

    xy = xy_ref[0]                       # (4, 8, tile_w)
    x1x, x1y = xy[0], xy[1]              # each (8, tile_w): full sublane use
    x2x, x2y = xy[2], xy[3]

    # Hoist the 18 fundamental-matrix coefficients (SMEM scalars) once.
    base = p * 18
    f = [fmat_ref[base + k] for k in range(18)]
    thsq = thsq_ref[0]

    # Epipolar line l = F12 @ [x1; y1; 1]; the homogeneous 1 becomes the +f[.] constant.
    l0 = f[0] * x1x + f[1] * x1y + f[2]
    l1 = f[3] * x1x + f[4] * x1y + f[5]
    l2 = f[6] * x1x + f[7] * x1y + f[8]
    num12 = l0 * x2x + l1 * x2y + l2
    den12 = l0 * l0 + l1 * l1

    m0 = f[9]  * x2x + f[10] * x2y + f[11]
    m1 = f[12] * x2x + f[13] * x2y + f[14]
    m2 = f[15] * x2x + f[16] * x2y + f[17]
    num21 = m0 * x1x + m1 * x1y + m2
    den21 = m0 * m0 + m1 * m1

    # |num| / sqrt(den) < th  <=>  num^2 < th^2 * den  (all operands >= 0).
    # Pure VALU: no EUP sqrt/divide and no den==0 NaN path.
    good = (num12 * num12 < thsq * den12) & (num21 * num21 < thsq * den21)

    # match index i -> (sublane i % 8, lane i // 8)  (interleaved host packing)
    col = lax.broadcasted_iota(jnp.int32, (SUB, tile_w), 1) + t * tile_w
    sub = lax.broadcasted_iota(jnp.int32, (SUB, tile_w), 0)
    valid = (col * SUB + sub) < nvalid_ref[p]
    part_ref[...] += (good & valid).astype(jnp.int32)

    @pl.when(t == pl.num_programs(1) - 1)
    def _():
        total = jnp.sum(part_ref[...], axis=1, keepdims=True)   # (8,1)
        total = jnp.sum(total, axis=0, keepdims=True)            # (1,1)
        ngood_ref[0] = jnp.broadcast_to(total, (SUB, OUT_LANES))


@jax.jit
def count_good_pairs_batched(packed, fmats, nvalid, thsq):
    """packed: [B,4,8,W] f32, fmats: [B*18] f32, nvalid: [B] i32, thsq: [1] f32
    -> [B] int32 number of 'good' matched pairs per image pair."""
    b, _, _, w = packed.shape
    tile_w = min(w, TILE_W_MAX)
    n_tiles = w // tile_w                # w is a multiple of tile_w by construction

    out = pl.pallas_call(
        _epi_count_kernel,
        out_shape=jax.ShapeDtypeStruct((b, SUB, OUT_LANES), jnp.int32),
        grid=(b, n_tiles),
        in_specs=[
            pl.BlockSpec(memory_space=pltpu.SMEM),                        # nvalid
            pl.BlockSpec(memory_space=pltpu.SMEM),                        # F12/F21 flat
            pl.BlockSpec(memory_space=pltpu.SMEM),                        # th^2
            pl.BlockSpec((1, 4, SUB, tile_w), lambda p, t: (p, 0, 0, t)), # packed kps
        ],
        out_specs=pl.BlockSpec((1, SUB, OUT_LANES), lambda p, t: (p, 0, 0)),
        scratch_shapes=[pltpu.VMEM((SUB, tile_w), jnp.int32)],
        compiler_params=pltpu.CompilerParams(
            dimension_semantics=("parallel", "arbitrary")),
    )(nvalid, fmats, thsq, packed)
    return out[:, 0, 0]


# ------------------------------ host glue ------------------------------------
@dataclass
class Image:
    K: jnp.ndarray   # [3,3] intrinsics
    R: jnp.ndarray   # [3,3] world->camera rotation
    t: jnp.ndarray   # [3]   world->camera translation


@dataclass
class MatchedPairs:
    kps1: jnp.ndarray     # [M1, 2]
    kps2: jnp.ndarray     # [M2, 2]
    matches: jnp.ndarray  # [2, P] int32


def fundamental_matrix_np(img1: Image, img2: Image) -> np.ndarray:
    """F such that x2^T F x1 = 0, computed on host (tiny 3x3 algebra)."""
    K1 = np.asarray(img1.K, np.float64)
    K2 = np.asarray(img2.K, np.float64)
    R1 = np.asarray(img1.R, np.float64)
    R2 = np.asarray(img2.R, np.float64)
    t1 = np.asarray(img1.t, np.float64)
    t2 = np.asarray(img2.t, np.float64)
    R = R2 @ R1.T
    t = t2 - R @ t1
    tx = np.array([[0.0, -t[2], t[1]],
                   [t[2], 0.0, -t[0]],
                   [-t[1], t[0], 0.0]])
    E = tx @ R
    F = np.linalg.inv(K2).T @ E @ np.linalg.inv(K1)
    return F.astype(np.float32)


def _pad_cols(n_matches: int) -> int:
    """Lane-column padding: power-of-two in [TILE_W_MIN, TILE_W_MAX] (single tile)
    or a multiple of TILE_W_MAX for very large match counts. Keeps retraces rare."""
    cols = -(-max(int(n_matches), 1) // SUB)
    w = 1 << (cols - 1).bit_length()
    w = max(TILE_W_MIN, w)
    if w <= TILE_W_MAX:
        return w
    return ((cols + TILE_W_MAX - 1) // TILE_W_MAX) * TILE_W_MAX


class DiscreteMetric:
    def __init__(self, th=2.0, lm_kp=0.0, lm_tp=1.0, lm_fp=-0.25):
        self.th = th
        self.lm_kp = lm_kp
        self.lm_tp = lm_tp
        self.lm_fp = lm_fp

    def forward(self, images, matches):
        # TODO(synk): the scene / image-pair enumeration, 3x3 fundamental-matrix
        # algebra and dict assembly are host-side (object arrays of python
        # dicts); all per-match epipolar classification runs on TPU in one
        # batched Pallas call.
        n_scenes, n_per_scene = images.shape
        assert matches.shape[0] == n_scenes
        assert matches.shape[1] == (n_per_scene - 1) * n_per_scene // 2

        # ---- phase 1: gather all image pairs (host) ----
        entries = []      # (i_scene, i_match, n_kps, n_pairs)
        kp1_sel, kp2_sel, f_flat = [], [], []
        for i_scene in range(n_scenes):
            i_match = 0
            scene_matches = matches[i_scene]
            scene_images = images[i_scene]
            for i_image1 in range(n_per_scene):
                image1 = scene_images[i_image1]
                for i_image2 in range(i_image1 + 1, n_per_scene):
                    image2 = scene_images[i_image2]
                    pairs = scene_matches[i_match]
                    m = np.asarray(pairs.matches)
                    k1 = np.asarray(pairs.kps1, np.float32)[m[0]]
                    k2 = np.asarray(pairs.kps2, np.float32)[m[1]]
                    F12 = fundamental_matrix_np(image1, image2)
                    n_kps = pairs.kps1.shape[0] + pairs.kps2.shape[0]
                    entries.append((i_scene, i_match, n_kps, m.shape[1]))
                    kp1_sel.append(k1)
                    kp2_sel.append(k2)
                    f_flat.append(np.concatenate(
                        [F12.reshape(-1), F12.T.reshape(-1)]).astype(np.float32))
                    i_match += 1

        stats = np.zeros(matches.shape, dtype=object)
        B = len(entries)
        if B == 0:
            return stats

        W = _pad_cols(max(k.shape[0] for k in kp1_sel))
        packed = np.zeros((B, 4, SUB, W), np.float32)
        nvalid = np.zeros((B,), np.int32)
        for b, (k1, k2) in enumerate(zip(kp1_sel, kp2_sel)):
            n = k1.shape[0]
            for c, chan in enumerate((k1[:, 0], k1[:, 1], k2[:, 0], k2[:, 1])):
                buf = np.zeros((SUB * W,), np.float32)
                buf[:n] = chan
                # match i -> (sublane i % 8, lane i // 8): fills all 8 sublanes
                packed[b, c] = buf.reshape(W, SUB).T
            nvalid[b] = n
        fmats = np.stack(f_flat).reshape(-1)
        thsq = np.array([self.th * self.th], np.float32)

        # ---- phase 2: one batched kernel launch, one host sync ----
        ngood_dev = count_good_pairs_batched(
            jnp.asarray(packed), jnp.asarray(fmats),
            jnp.asarray(nvalid), jnp.asarray(thsq))
        ngood = np.asarray(jax.block_until_ready(ngood_dev))

        # ---- phase 3: assemble stats dicts (host) ----
        for b, (i_scene, i_match, n_kps, n_pairs) in enumerate(entries):
            n_good = int(ngood[b])
            n_bad = n_pairs - n_good
            prec = n_good / (n_pairs + 1)
            reward = self.lm_tp * n_good + self.lm_fp * n_bad + self.lm_kp * n_kps
            stats[i_scene, i_match] = {'n_kps': n_kps, 'n_pairs': n_pairs,
                                       'tp': n_good, 'fp': n_bad,
                                       'reward': reward, 'precision': prec}
        return stats


# ------------------------------- demo ----------------------------------------
def _rot(axis, ang):
    axis = np.asarray(axis, np.float32)
    axis = axis / np.linalg.norm(axis)
    a = np.cos(ang / 2.0)
    b, c, d = -axis * np.sin(ang / 2.0)
    return np.array([
        [a*a+b*b-c*c-d*d, 2*(b*c+a*d),     2*(b*d-a*c)],
        [2*(b*c-a*d),     a*a+c*c-b*b-d*d, 2*(c*d+a*b)],
        [2*(b*d+a*c),     2*(c*d-a*b),     a*a+d*d-b*b-c*c]], np.float32)


if __name__ == "__main__":
    key = jax.random.PRNGKey(0)
    n_scenes, n_per_scene = 2, 3
    n_kps_img = 12            # keypoints per image
    n_matches = 8             # matched pairs per image pair

    K = np.array([[100.0, 0.0, 64.0],
                  [0.0, 100.0, 64.0],
                  [0.0, 0.0, 1.0]], np.float32)
    cams = []
    for c in range(n_per_scene):
        R = _rot([0.0, 1.0, 0.0], 0.08 * c)
        t = np.array([0.3 * c, 0.05 * c, 0.0], np.float32)
        cams.append(Image(K=jnp.asarray(K), R=jnp.asarray(R), t=jnp.asarray(t)))

    keys = jax.random.split(key, 1 + n_scenes)
    # Shared 3D points in front of all cameras -> consistent correspondences.
    pts3d = jax.random.uniform(keys[0], (n_kps_img, 3), minval=-1.0, maxval=1.0)
    pts3d = pts3d + jnp.array([0.0, 0.0, 5.0])

    def project(cam, pts):
        pc = pts @ cam.R.T + cam.t
        pix = pc @ cam.K.T
        return pix[:, :2] / pix[:, 2:3]

    # Matches: first 5 correct correspondences, last 3 deliberately mismatched.
    idx1 = jnp.arange(n_matches, dtype=jnp.int32)
    idx2 = jnp.concatenate([jnp.arange(5, dtype=jnp.int32),
                            jnp.array([9, 10, 11], jnp.int32)])
    match_idx = jnp.stack([idx1, idx2])

    images = np.empty((n_scenes, n_per_scene), dtype=object)
    n_pairs_per_scene = (n_per_scene - 1) * n_per_scene // 2
    matches = np.empty((n_scenes, n_pairs_per_scene), dtype=object)
    for s in range(n_scenes):
        noise = 0.5 * jax.random.normal(keys[1 + s], (n_per_scene, n_kps_img, 2))
        kps_per_img = [project(cams[c], pts3d) + noise[c] for c in range(n_per_scene)]
        for c in range(n_per_scene):
            images[s, c] = cams[c]
        i_match = 0
        for i in range(n_per_scene):
            for j in range(i + 1, n_per_scene):
                matches[s, i_match] = MatchedPairs(
                    kps1=kps_per_img[i], kps2=kps_per_img[j], matches=match_idx)
                i_match += 1

    metric = DiscreteMetric(th=2.0, lm_kp=0.0, lm_tp=1.0, lm_fp=-0.25)
    stats = metric.forward(images, matches)   # blocks on the kernel internally

    # ---- test-only host reference check (kept out of the production path) ----
    def ref_tp(k1, k2, F12, th):
        k1 = np.asarray(k1, np.float32)
        k2 = np.asarray(k2, np.float32)
        x1 = np.concatenate([k1, np.ones((k1.shape[0], 1), np.float32)], axis=1)
        x2 = np.concatenate([k2, np.ones((k2.shape[0], 1), np.float32)], axis=1)
        l12 = x1 @ F12.T
        d12 = np.abs(np.sum(l12 * x2, axis=1)) / np.linalg.norm(l12[:, :2], axis=1)
        F21 = F12.T
        l21 = x2 @ F21.T
        d21 = np.abs(np.sum(l21 * x1, axis=1)) / np.linalg.norm(l21[:, :2], axis=1)
        return int(np.sum((d12 < th) & (d21 < th)))

    for s in range(n_scenes):
        i_match = 0
        for i in range(n_per_scene):
            for j in range(i + 1, n_per_scene):
                pr = matches[s, i_match]
                m = np.asarray(pr.matches)
                k1 = np.asarray(pr.kps1)[m[0]]
                k2 = np.asarray(pr.kps2)[m[1]]
                F12 = fundamental_matrix_np(images[s, i], images[s, j])
                expect_tp = ref_tp(k1, k2, F12, metric.th)
                got = stats[s, i_match]
                assert got['n_pairs'] == m.shape[1]
                assert got['tp'] == expect_tp, (got['tp'], expect_tp)
                assert isinstance(got['reward'], float) or np.isscalar(got['reward'])
                i_match += 1

    print("KERNEL_OK")
</pallas_src>

<mosaic_0001>
module attributes {stable_mosaic.version = 11 : i64} {
  func.func @_epi_count_kernel(%arg0: i32, %arg1: i32, %arg2: memref<6xi32, #tpu.memory_space<smem>>, %arg3: memref<108xf32, #tpu.memory_space<smem>>, %arg4: memref<1xf32, #tpu.memory_space<smem>>, %arg5: memref<1x4x8x256xf32, #tpu.memory_space<vmem>>, %arg6: memref<1x8x128xi32, #tpu.memory_space<vmem>>, %arg7: memref<8x256xi32, #tpu.memory_space<vmem>>) attributes {dimension_semantics = [#tpu.dimension_semantics<parallel>, #tpu.dimension_semantics<arbitrary>], iteration_bounds = array<i64: 6, 1>, scalar_prefetch = 0 : i64, scratch_operands = 1 : i64, tpu.core_type = #tpu.core_type<tc>, window_params = [{transform_indices = @transform_0, window_bounds = array<i64: 6>}, {transform_indices = @transform_1, window_bounds = array<i64: 108>}, {transform_indices = @transform_2, window_bounds = array<i64: 1>}, {transform_indices = @transform_3, window_bounds = array<i64: 1, 4, 8, 256>}, {transform_indices = @transform_4, window_bounds = array<i64: 1, 8, 128>}]} {
    %c0_i32 = arith.constant 0 : i32
    %0 = arith.cmpi eq, %arg1, %c0_i32 : i32
    %1 = arith.extui %0 : i1 to i32
    %c0_i32_0 = arith.constant 0 : i32
    %2 = arith.cmpi ne, %1, %c0_i32_0 : i32
    scf.if %2 {
      %c0_i32_13 = arith.constant 0 : i32
      %154 = vector.broadcast %c0_i32_13 : i32 to vector<8x256xi32>
      %c0_14 = arith.constant 0 : index
      %c0_15 = arith.constant 0 : index
      %155 = vector.load %arg7[%c0_14, %c0_15] : memref<8x256xi32, #tpu.memory_space<vmem>>, vector<8x256xi32>
      tpu.vector_store %arg7[%c0_14, %c0_15], %154 {strides = array<i32>} : memref<8x256xi32, #tpu.memory_space<vmem>>, vector<8x256xi32>,
    } else {
    }
    %c0 = arith.constant 0 : index
    %c0_1 = arith.constant 0 : index
    %c0_2 = arith.constant 0 : index
    %c0_3 = arith.constant 0 : index
    %3 = vector.load %arg5[%c0, %c0_1, %c0_2, %c0_3] : memref<1x4x8x256xf32, #tpu.memory_space<vmem>>, vector<1x4x8x256xf32>
    %4 = vector.shape_cast %3 : vector<1x4x8x256xf32> to vector<4x8x256xf32>
    %5 = vector.extract_strided_slice %4 {offsets = [0, 0, 0], sizes = [1, 8, 256], strides = [1, 1, 1]} : vector<4x8x256xf32> to vector<1x8x256xf32>
    %6 = vector.shape_cast %5 : vector<1x8x256xf32> to vector<8x256xf32>
    %7 = vector.extract_strided_slice %4 {offsets = [1, 0, 0], sizes = [1, 8, 256], strides = [1, 1, 1]} : vector<4x8x256xf32> to vector<1x8x256xf32>
    %8 = vector.shape_cast %7 : vector<1x8x256xf32> to vector<8x256xf32>
    %9 = vector.extract_strided_slice %4 {offsets = [2, 0, 0], sizes = [1, 8, 256], strides = [1, 1, 1]} : vector<4x8x256xf32> to vector<1x8x256xf32>
    %10 = vector.shape_cast %9 : vector<1x8x256xf32> to vector<8x256xf32>
    %11 = vector.extract_strided_slice %4 {offsets = [3, 0, 0], sizes = [1, 8, 256], strides = [1, 1, 1]} : vector<4x8x256xf32> to vector<1x8x256xf32>
    %12 = vector.shape_cast %11 : vector<1x8x256xf32> to vector<8x256xf32>
    %c18_i32 = arith.constant 18 : i32
    %13 = arith.muli %arg0, %c18_i32 : i32
    %c0_i32_4 = arith.constant 0 : i32
    %14 = arith.addi %13, %c0_i32_4 : i32
    %15 = arith.index_cast %14 : i32 to index
    %16 = memref.load %arg3[%15] : memref<108xf32, #tpu.memory_space<smem>>
    %c1_i32 = arith.constant 1 : i32
    %17 = arith.addi %13, %c1_i32 : i32
    %18 = arith.index_cast %17 : i32 to index
    %19 = memref.load %arg3[%18] : memref<108xf32, #tpu.memory_space<smem>>
    %c2_i32 = arith.constant 2 : i32
    %20 = arith.addi %13, %c2_i32 : i32
    %21 = arith.index_cast %20 : i32 to index
    %22 = memref.load %arg3[%21] : memref<108xf32, #tpu.memory_space<smem>>
    %c3_i32 = arith.constant 3 : i32
    %23 = arith.addi %13, %c3_i32 : i32
    %24 = arith.index_cast %23 : i32 to index
    %25 = memref.load %arg3[%24] : memref<108xf32, #tpu.memory_space<smem>>
    %c4_i32 = arith.constant 4 : i32
    %26 = arith.addi %13, %c4_i32 : i32
    %27 = arith.index_cast %26 : i32 to index
    %28 = memref.load %arg3[%27] : memref<108xf32, #tpu.memory_space<smem>>
    %c5_i32 = arith.constant 5 : i32
    %29 = arith.addi %13, %c5_i32 : i32
    %30 = arith.index_cast %29 : i32 to index
    %31 = memref.load %arg3[%30] : memref<108xf32, #tpu.memory_space<smem>>
    %c6_i32 = arith.constant 6 : i32
    %32 = arith.addi %13, %c6_i32 : i32
    %33 = arith.index_cast %32 : i32 to index
    %34 = memref.load %arg3[%33] : memref<108xf32, #tpu.memory_space<smem>>
    %c7_i32 = arith.constant 7 : i32
    %35 = arith.addi %13, %c7_i32 : i32
    %36 = arith.index_cast %35 : i32 to index
    %37 = memref.load %arg3[%36] : memref<108xf32, #tpu.memory_space<smem>>
    %c8_i32 = arith.constant 8 : i32
    %38 = arith.addi %13, %c8_i32 : i32
    %39 = arith.index_cast %38 : i32 to index
    %40 = memref.load %arg3[%39] : memref<108xf32, #tpu.memory_space<smem>>
    %c9_i32 = arith.constant 9 : i32
    %41 = arith.addi %13, %c9_i32 : i32
    %42 = arith.index_cast %41 : i32 to index
    %43 = memref.load %arg3[%42] : memref<108xf32, #tpu.memory_space<smem>>
    %c10_i32 = arith.constant 10 : i32
    %44 = arith.addi %13, %c10_i32 : i32
    %45 = arith.index_cast %44 : i32 to index
    %46 = memref.load %arg3[%45] : memref<108xf32, #tpu.memory_space<smem>>
    %c11_i32 = arith.constant 11 : i32
    %47 = arith.addi %13, %c11_i32 : i32
    %48 = arith.index_cast %47 : i32 to index
    %49 = memref.load %arg3[%48] : memref<108xf32, #tpu.memory_space<smem>>
    %c12_i32 = arith.constant 12 : i32
    %50 = arith.addi %13, %c12_i32 : i32
    %51 = arith.index_cast %50 : i32 to index
    %52 = memref.load %arg3[%51] : memref<108xf32, #tpu.memory_space<smem>>
    %c13_i32 = arith.constant 13 : i32
    %53 = arith.addi %13, %c13_i32 : i32
    %54 = arith.index_cast %53 : i32 to index
    %55 = memref.load %arg3[%54] : memref<108xf32, #tpu.memory_space<smem>>
    %c14_i32 = arith.constant 14 : i32
    %56 = arith.addi %13, %c14_i32 : i32
    %57 = arith.index_cast %56 : i32 to index
    %58 = memref.load %arg3[%57] : memref<108xf32, #tpu.memory_space<smem>>
    %c15_i32 = arith.constant 15 : i32
    %59 = arith.addi %13, %c15_i32 : i32
    %60 = arith.index_cast %59 : i32 to index
    %61 = memref.load %arg3[%60] : memref<108xf32, #tpu.memory_space<smem>>
    %c16_i32 = arith.constant 16 : i32
    %62 = arith.addi %13, %c16_i32 : i32
    %63 = arith.index_cast %62 : i32 to index
    %64 = memref.load %arg3[%63] : memref<108xf32, #tpu.memory_space<smem>>
    %c17_i32 = arith.constant 17 : i32
    %65 = arith.addi %13, %c17_i32 : i32
    %66 = arith.index_cast %65 : i32 to index
    %67 = memref.load %arg3[%66] : memref<108xf32, #tpu.memory_space<smem>>
    %c0_5 = arith.constant 0 : index
    %68 = memref.load %arg4[%c0_5] : memref<1xf32, #tpu.memory_space<smem>>
    %69 = vector.broadcast %16 : f32 to vector<8x256xf32>
    %70 = arith.mulf %69, %6 : vector<8x256xf32>
    %71 = vector.broadcast %19 : f32 to vector<8x256xf32>
    %72 = arith.mulf %71, %8 : vector<8x256xf32>
    %73 = arith.addf %70, %72 : vector<8x256xf32>
    %74 = vector.broadcast %22 : f32 to vector<8x256xf32>
    %75 = arith.addf %73, %74 : vector<8x256xf32>
    %76 = vector.broadcast %25 : f32 to vector<8x256xf32>
    %77 = arith.mulf %76, %6 : vector<8x256xf32>
    %78 = vector.broadcast %28 : f32 to vector<8x256xf32>
    %79 = arith.mulf %78, %8 : vector<8x256xf32>
    %80 = arith.addf %77, %79 : vector<8x256xf32>
    %81 = vector.broadcast %31 : f32 to vector<8x256xf32>
    %82 = arith.addf %80, %81 : vector<8x256xf32>
    %83 = vector.broadcast %34 : f32 to vector<8x256xf32>
    %84 = arith.mulf %83, %6 : vector<8x256xf32>
    %85 = vector.broadcast %37 : f32 to vector<8x256xf32>
    %86 = arith.mulf %85, %8 : vector<8x256xf32>
    %87 = arith.addf %84, %86 : vector<8x256xf32>
    %88 = vector.broadcast %40 : f32 to vector<8x256xf32>
    %89 = arith.addf %87, %88 : vector<8x256xf32>
    %90 = arith.mulf %75, %10 : vector<8x256xf32>
    %91 = arith.mulf %82, %12 : vector<8x256xf32>
    %92 = arith.addf %90, %91 : vector<8x256xf32>
    %93 = arith.addf %92, %89 : vector<8x256xf32>
    %94 = arith.mulf %75, %75 : vector<8x256xf32>
    %95 = arith.mulf %82, %82 : vector<8x256xf32>
    %96 = arith.addf %94, %95 : vector<8x256xf32>
    %97 = vector.broadcast %43 : f32 to vector<8x256xf32>
    %98 = arith.mulf %97, %10 : vector<8x256xf32>
    %99 = vector.broadcast %46 : f32 to vector<8x256xf32>
    %100 = arith.mulf %99, %12 : vector<8x256xf32>
    %101 = arith.addf %98, %100 : vector<8x256xf32>
    %102 = vector.broadcast %49 : f32 to vector<8x256xf32>
    %103 = arith.addf %101, %102 : vector<8x256xf32>
    %104 = vector.broadcast %52 : f32 to vector<8x256xf32>
    %105 = arith.mulf %104, %10 : vector<8x256xf32>
    %106 = vector.broadcast %55 : f32 to vector<8x256xf32>
    %107 = arith.mulf %106, %12 : vector<8x256xf32>
    %108 = arith.addf %105, %107 : vector<8x256xf32>
    %109 = vector.broadcast %58 : f32 to vector<8x256xf32>
    %110 = arith.addf %108, %109 : vector<8x256xf32>
    %111 = vector.broadcast %61 : f32 to vector<8x256xf32>
    %112 = arith.mulf %111, %10 : vector<8x256xf32>
    %113 = vector.broadcast %64 : f32 to vector<8x256xf32>
    %114 = arith.mulf %113, %12 : vector<8x256xf32>
    %115 = arith.addf %112, %114 : vector<8x256xf32>
    %116 = vector.broadcast %67 : f32 to vector<8x256xf32>
    %117 = arith.addf %115, %116 : vector<8x256xf32>
    %118 = arith.mulf %103, %6 : vector<8x256xf32>
    %119 = arith.mulf %110, %8 : vector<8x256xf32>
    %120 = arith.addf %118, %119 : vector<8x256xf32>
    %121 = arith.addf %120, %117 : vector<8x256xf32>
    %122 = arith.mulf %103, %103 : vector<8x256xf32>
    %123 = arith.mulf %110, %110 : vector<8x256xf32>
    %124 = arith.addf %122, %123 : vector<8x256xf32>
    %125 = arith.mulf %93, %93 : vector<8x256xf32>
    %126 = vector.broadcast %68 : f32 to vector<8x256xf32>
    %127 = arith.mulf %126, %96 : vector<8x256xf32>
    %128 = arith.cmpf olt, %125, %127 : vector<8x256xf32>
    %129 = arith.mulf %121, %121 : vector<8x256xf32>
    %130 = vector.broadcast %68 : f32 to vector<8x256xf32>
    %131 = arith.mulf %130, %124 : vector<8x256xf32>
    %132 = arith.cmpf olt, %129, %131 : vector<8x256xf32>
    %133 = arith.andi %128, %132 : vector<8x256xi1>
    %134 = tpu.iota {dimensions = array<i32: 1>} : vector<8x256xi32>
    %c256_i32 = arith.constant 256 : i32
    %135 = arith.muli %arg1, %c256_i32 : i32
    %136 = vector.broadcast %135 : i32 to vector<8x256xi32>
    %137 = arith.addi %134, %136 : vector<8x256xi32>
    %138 = tpu.iota {dimensions = array<i32: 0>} : vector<8x256xi32>
    %c8_i32_6 = arith.constant 8 : i32
    %139 = vector.broadcast %c8_i32_6 : i32 to vector<8x256xi32>
    %140 = arith.muli %137, %139 : vector<8x256xi32>
    %141 = arith.addi %140, %138 : vector<8x256xi32>
    %142 = arith.index_cast %arg0 : i32 to index
    %143 = memref.load %arg2[%142] : memref<6xi32, #tpu.memory_space<smem>>
    %144 = vector.broadcast %143 : i32 to vector<8x256xi32>
    %145 = arith.cmpi slt, %141, %144 : vector<8x256xi32>
    %c0_7 = arith.constant 0 : index
    %c0_8 = arith.constant 0 : index
    %146 = vector.load %arg7[%c0_7, %c0_8] : memref<8x256xi32, #tpu.memory_space<vmem>>, vector<8x256xi32>
    %147 = arith.andi %133, %145 : vector<8x256xi1>
    %148 = arith.extui %147 : vector<8x256xi1> to vector<8x256xi32>
    %149 = arith.addi %146, %148 : vector<8x256xi32>
    %c0_9 = arith.constant 0 : index
    %c0_10 = arith.constant 0 : index
    %150 = vector.load %arg7[%c0_9, %c0_10] : memref<8x256xi32, #tpu.memory_space<vmem>>, vector<8x256xi32>
    tpu.vector_store %arg7[%c0_9, %c0_10], %149 {strides = array<i32>} : memref<8x256xi32, #tpu.memory_space<vmem>>, vector<8x256xi32>,
    %c0_i32_11 = arith.constant 0 : i32
    %151 = arith.cmpi eq, %arg1, %c0_i32_11 : i32
    %152 = arith.extui %151 : i1 to i32
    %c0_i32_12 = arith.constant 0 : i32
    %153 = arith.cmpi ne, %152, %c0_i32_12 : i32
    scf.if %153 {
      %c0_13 = arith.constant 0 : index
      %c0_14 = arith.constant 0 : index
      %154 = vector.load %arg7[%c0_13, %c0_14] : memref<8x256xi32, #tpu.memory_space<vmem>>, vector<8x256xi32>
      %cst = arith.constant dense<0> : vector<8xi32>
      %155 = vector.multi_reduction <add>, %154, %cst [1] : vector<8x256xi32> to vector<8xi32>
      %156 = vector.shape_cast %155 : vector<8xi32> to vector<8x1xi32>
      %cst_15 = arith.constant dense<0> : vector<1xi32>
      %157 = vector.multi_reduction <add>, %156, %cst_15 [0] : vector<8x1xi32> to vector<1xi32>
      %158 = vector.shape_cast %157 : vector<1xi32> to vector<1x1xi32>
      %159 = vector.shape_cast %158 : vector<1x1xi32> to vector<1x1xi32>
      %160 = vector.broadcast %159 : vector<1x1xi32> to vector<8x128xi32>
      %c0_16 = arith.constant 0 : index
      %c0_17 = arith.constant 0 : index
      %c0_18 = arith.constant 0 : index
      %161 = vector.load %arg6[%c0_16, %c0_17, %c0_18] : memref<1x8x128xi32, #tpu.memory_space<vmem>>, vector<1x8x128xi32>
      %162 = vector.shape_cast %161 : vector<1x8x128xi32> to vector<8x128xi32>
      %163 = vector.shape_cast %160 : vector<8x128xi32> to vector<1x8x128xi32>
      tpu.vector_store %arg6[%c0_16, %c0_17, %c0_18], %163 {strides = array<i32>} : memref<1x8x128xi32, #tpu.memory_space<vmem>>, vector<1x8x128xi32>,
    } else {
    }
    return
  }
  func.func @transform_0(%arg0: i32, %arg1: i32) -> i32 {
    %c0_i32 = arith.constant 0 : i32
    %c0_i32_0 = arith.constant 0 : i32
    return %c0_i32 : i32
  }
  func.func @transform_1(%arg0: i32, %arg1: i32) -> i32 {
    %c0_i32 = arith.constant 0 : i32
    %c0_i32_0 = arith.constant 0 : i32
    return %c0_i32 : i32
  }
  func.func @transform_2(%arg0: i32, %arg1: i32) -> i32 {
    %c0_i32 = arith.constant 0 : i32
    %c0_i32_0 = arith.constant 0 : i32
    return %c0_i32 : i32
  }
  func.func @transform_3(%arg0: i32, %arg1: i32) -> (i32, i32, i32, i32) {
    %c0_i32 = arith.constant 0 : i32
    %c0_i32_0 = arith.constant 0 : i32
    %c0_i32_1 = arith.constant 0 : i32
    return %arg0, %c0_i32, %c0_i32_0, %arg1 : i32, i32, i32, i32
  }
  func.func @transform_4(%arg0: i32, %arg1: i32) -> (i32, i32, i32) {
    %c0_i32 = arith.constant 0 : i32
    %c0_i32_0 = arith.constant 0 : i32
    %c0_i32_1 = arith.constant 0 : i32
    return %arg0, %c0_i32, %c0_i32_0 : i32, i32, i32
  }
}

</mosaic_0001>

<bundles_post_ra>
// kernel: count_good_pairs_batched.1
= control target key start
LH: loop header
LB: loop body
LE: loop exit
PB: predicated region body
PF: predicated region fallthrough
CT: control target
= control target key end

     0   :  { %s1112_s0 = inlined_call_operand.vmem [shape: s32[6], index: 0, kind: input, shape index: {}]   ;;  %s1113_s1 = inlined_call_operand.vmem [shape: f32[108], index: 1, kind: input, shape index: {}]   ;;  %s1114_s2 = inlined_call_operand.<no memory space> [shape: f32[1], index: 2, kind: input, shape index: {}]   ;;  %s1115_s3 = inlined_call_operand.hbm [shape: f32[6,4,8,256], index: 3, kind: input, shape index: {}]   ;;  %s1116_s4 = inlined_call_operand.vmem [shape: s32[6,8,128], index: 4, kind: output, shape index: {}]  }
   0x1   :  { %9 = sst [smem:[#allocation3]] %s1114_s2 }
   0x2   :  { %10 = vsyncpa [#allocation6], 0 }
   0x3   :  { %11 = vsyncpa [#allocation8], 0 }
   0x4   :  { %12 = vsyncpa [#allocation5], 0 }
   0x5   :  { %14 = vsyncpa [#allocation5 + $0x1], 0  ;;  %s821_s17 = smov 0   ;;  %s823_s18 = smov 0  }
   0x6   :  { %s825_s19 = smov 0   ;;  %s827_s20 = smov 0  }
   0x7   :  { %s829_s21 = smov 0   ;;  %s831_s22 = smov 0  }
   0x8 LB: > { %s571_s2 = sadd.s32 4294967295, %s785_s22   ;;  %s104_s23 = sadd.s32 1, %s773_s19  ;;  %s785_s22 = sphi %s831_s22, %s20_s22   ;;  %s781_s21 = sphi %s829_s21, %s1135_s21   ;;  %s777_s20 = sphi %s827_s20, %s1134_s20   ;;  %s773_s19 = sphi %s825_s19, %s1133_s19   ;;  %s769_s18 = sphi %s823_s18, %s1132_s18   ;;  %s765_s17 = sphi %s821_s17, %s1131_s17  }
   0x9   : > { %p111_p0 = scmp.ne.s32.totalorder %s773_s19, %s769_s18  ;;  %p112_p1 = scmp.eq.s32.totalorder %s785_s22, 0 }
   0xa   : > { %p117_p2 = scmp.ne.s32.totalorder %s769_s18, %s765_s17  ;;  %p855_p3 = scmp.eq.s32.totalorder %s571_s2, 0 }
   0xb   : > { %p113_p4 = por %p112_p1, %p111_p0  ;;  %p573_p5 = scmp.ge.s32.totalorder %s785_s22, 1 }
   0xc   : > { %s1122_s24 = scalar_select %p855_p3, 1, 0 }
   0xd   : > { %p862_p6 = por %p855_p3, %p117_p2  ;;  %p154_p7 = scmp.lt.s32.totalorder %s785_s22, 7 }
   0xe   : > { %s167_s28 = sshll.u32 %s1112_s0, 4  ;;  %p611_p10 = scmp.lt.s32.totalorder %s785_s22, 6  ;;  %s168_s28 = int_to_ptr.vmem [resolvable:$true] %s167_s28 }
   0xf   : > { %s1123_s25 = scalar_select %p862_p6, 1, 0 }
  0x10   : > { %p870_p8 = pnand %p573_p5, %p154_p7  ;;  %s178_s6 = sshll.u32 %s1113_s1, 4  ;;  %s179_s6 = int_to_ptr.vmem [resolvable:$true] %s178_s6 }
  0x11   : > { %p886_p12 = pnand %p611_p10, %p113_p4  ;;  %s667_s9 = scalar_lea.vmem %s168_s28, 16 }
  0x12   : > { %s1124_s29 = scalar_select %p870_p8, 1, 0 }
  0x13   : > { %p598_p9 = pneg %p870_p8  ;;  %p668_p13 = scmp.ne.s32.totalorder %s168_s28, %s667_s9 }
  0x14   : > { %s1126_s8 = scalar_select %p886_p12, 1, 0 }
  0x15   : > { %p882_p11 = pnand %p598_p9, %p855_p3  ;;  %p675_p5 = scmp.lt.s32.totalorder %s168_s28, %s168_s28 }
  0x16   : > { %p676_p7 = scmp.lt.s32.totalorder %s667_s9, %s667_s9 }
  0x17   : > { %p669_p0 = pneg %p882_p11 }
  0x18   : > { %p677_p6 = por %p676_p7, %p675_p5 }
  0x19   : > { %p670_p1 = pnand %p669_p0, %p668_p13 }
  0x1b   : > { %p671_p2 = pneg %p670_p1 }
  0x1d   : > { %p678_p8 = pnand %p677_p6, %p671_p2 }
  0x1f   : > { %681 = shalt.err (!%p678_p8)
}
  0x20   : > { %s787_s10 = smov [#allocation4]   ;;  %s682_s11 = scalar_lea.vmem %s179_s6, 16 }
  0x21   : > { %601 = dma.vmem_to_smem (!%p882_p11), %s168_s28, 16, %s787_s10, [#allocation6]  }
  0x22   : > { %p683_p4 = scmp.ne.s32.totalorder %s179_s6, %s682_s11  ;;  %p690_p3 = scmp.lt.s32.totalorder %s179_s6, %s179_s6 }
  0x23   : > { %p691_p12 = scmp.lt.s32.totalorder %s682_s11, %s682_s11 }
  0x24   : > { %p685_p9 = pnand %p683_p4, %p669_p0 }
  0x25   : > { %p692_p13 = por %p691_p12, %p690_p3 }
  0x26   : > { %p686_p10 = pneg %p685_p9 }
  0x28   : > { %p693_p1 = pnand %p692_p13, %p686_p10 }
  0x2a   : > { %696 = shalt.err (!%p693_p1)
}
  0x2b   : > { %s788_s12 = smov [#allocation7]   ;;  %s192_s13 = sand.u32 1, %s773_s19  }
  0x2c   : > { %604 = dma.vmem_to_smem (!%p882_p11), %s179_s6, 16, %s788_s12, [#allocation8]  }
  0x2d   : > { %s32_s14 = sadd.s32 1, %s781_s21  ;;  %s577_s15 = sshll.u32 %s192_s13, 6 }
  0x2e   : > { %p34_p6 = scmp.ge.s32.totalorder %s32_s14, 6  ;;  %s587_s16 = sshll.u32 %s781_s21, 10 }
  0x2f   : > { %s904_s26 = scalar_lea.hbm %s1115_s3, %s587_s16  ;;  %s196_s27 = scalar_lea.vmem [#allocation9], %s577_s15 }
  0x30   : > { %s1137_s14 = smov (%p34_p6, %s32_s14), 0  ;;  %s205_s28 = sshll.u32 %s196_s27, 4  ;;  %s908_s28 = int_to_ptr.vmem [resolvable:$true] %s205_s28 }
  0x31   : > { %s99_s30 = ssub.s32 %s781_s21, %s1137_s14  ;;  %s915_s6 = scalar_lea.sflag [#allocation5], %s192_s13 }
  0x32   : > { %p102_p3 = scmp.eq.s32.totalorder %s99_s30, 0  ;;  %s697_s7 = scalar_lea.hbm %s904_s26, 1024 }
  0x33   : > { %p698_p8 = scmp.ne.s32.totalorder %s904_s26, %s697_s7  ;;  %p1127_p11 = scmp.ne.s32.totalorder %s1126_s8, 0 }
  0x34   : > { %s913_s5 = scalar_select %p102_p3, %s773_s19, %s104_s23  }
  0x35   : > { %p699_p12 = pneg %p1127_p11  ;;  %s702_s11 = scalar_lea.hbm %s1115_s3, 6144 }
  0x36   : > { %p703_p5 = scmp.lt.u32.totalorder %s904_s26, %s1115_s3  ;;  %p704_p7 = scmp.lt.u32.totalorder %s702_s11, %s697_s7 }
  0x37   : > { %p700_p0 = pnand %p699_p12, %p698_p8  ;;  %p706_p9 = scmp.lt.u32.totalorder %s697_s7, %s904_s26 }
  0x38   : > { %p705_p4 = por %p704_p7, %p703_p5 }
  0x39   : > { %p701_p2 = pneg %p700_p0 }
  0x3a   : > { %p707_p10 = por %p706_p9, %p705_p4 }
  0x3c   : > { %p708_p13 = pnand %p707_p10, %p701_p2 }
  0x3e   : > { %711 = shalt.err (!%p708_p13)
}
  0x3f   : > { %s712_s23 = scalar_lea.vmem %s908_s28, 1024  ;;  %s789_s13 = smov [#allocation9]  }
  0x40   : > { %p713_p1 = scmp.ne.s32.totalorder %s908_s28, %s712_s23  ;;  %s717_s16 = sshll.u32 %s789_s13, 4  ;;  %s718_s16 = int_to_ptr.vmem [resolvable:$false] %s717_s16 }
  0x41   : > { %s719_s17 = scalar_lea.vmem %s718_s16, 2048  ;;  %p720_p8 = scmp.lt.s32.totalorder %s908_s28, %s718_s16 }
  0x42   : > { %p715_p6 = pnand %p713_p1, %p699_p12  ;;  %p721_p0 = scmp.lt.s32.totalorder %s719_s17, %s712_s23 }
  0x44   : > { %p716_p3 = pneg %p715_p6  ;;  %p722_p5 = por %p721_p0, %p720_p8 }
  0x46   : > { %p723_p7 = pnand %p722_p5, %p716_p3 }
  0x48   : > { %726 = shalt.err (!%p723_p7)
}
  0x49   : > { %s790_s2 = smov 256   ;;  %s791_s27 = smov 16  }
  0x4a   : > { %608 = dma.hbm_to_vmem [thread:$0]  (!%p1127_p11), %s904_s26, 1024, %s908_s28, %s915_s6, %s790_s2, %s790_s2, %s791_s27  }
  0x4b   : > { %p1128_p12 = scmp.ne.s32.totalorder %s1124_s29, 0 }
  0x4c   : > { %p1129_p2 = scmp.ne.s32.totalorder (!%p1128_p12), %s1122_s24, 0 }
  0x4d   : > { %217 = sbr.rel (%p1128_p12) target bundleno = 307 (0x133), region = 36 }
  0x54   : > { %752 = dma.done.wait (%p1129_p2), [#allocation6], 16  }
  0x55   : > { %754 = vsyncadd (%p1129_p2), [#allocation6], 4294967280 }
  0x56   : > { %756 = dma.done.wait (%p1129_p2), [#allocation8], 16  }
  0x57   : > { %758 = vsyncadd (%p1129_p2), [#allocation8], 4294967280  ;;  %s227_s30 = sand.u32 1, %s769_s18   ;;  %p1130_p11 = scmp.ne.s32.totalorder %s1123_s25, 0 }
  0x58   : > { %s583_s8 = sshll.u32 %s227_s30, 6  ;;  %s228_s26 = scalar_lea.sflag [#allocation5], %s227_s30 }
  0x59   : > { %s954_s28 = scalar_lea.vmem [#allocation9], %s583_s8 }
  0x5a   : > { %760 = dma.done.wait (%p1130_p11), %s228_s26, 1024  }
  0x5b   : > { %762 = vsyncadd (%p1130_p11), %s228_s26, 4294966272 }
  0x5c   : > { %236 = sfence }
  0x5d   : > { %s961_s29 = smul.u32 18, %s777_s20  ;;  %s963_s24 = sld [smem:[#allocation3]]  ;;  %v421_v0 = vlaneseq  ;;  %v975_v1 = vld [vmem:[%s954_s28] sm:$0xff]  ;;  %v978_v2 = vld [vmem:[%s954_s28 + $0x8] sm:$0xff]  ;;  %v984_v3 = vld [vmem:[%s954_s28 + $0x10] sm:$0xff] }
  0x5e   : > { %v987_v4 = vld [vmem:[%s954_s28 + $0x18] sm:$0xff]  ;;  %v271_v31 = vld [vmem:[%s954_s28 + $0x20] sm:$0xff]  ;;  %v272_v36 = vld [vmem:[%s954_s28 + $0x28] sm:$0xff]  ;;  %p257_p4 = scmp.lt.s32.totalorder %s777_s20, 5 }
  0x5f   : > { %s276_s6 = sld [smem:[#allocation7 + %s961_s29]]  ;;  %s277_s25 = sadd.s32 1, %s961_s29  ;;  %v992_v5 = vand.u32 127, %v421_v0  ;;  %v1027_v21 = vshrl.u32 %v421_v0, 7  ;;  %v273_v45 = vld [vmem:[%s954_s28 + $0x30] sm:$0xff]  ;;  %v274_v46 = vld [vmem:[%s954_s28 + $0x38] sm:$0xff] }
  0x60   : > { %s278_s7 = sld [smem:[#allocation7 + %s277_s25]]  ;;  %s279_s9 = sadd.s32 2, %s961_s29 }
  0x61   : > { %s968_s10 = sld [smem:[#allocation7 + %s279_s9]]  ;;  %s281_s11 = sadd.s32 3, %s961_s29  ;;  %v1013_v14 = vadd.s32 128, %v992_v5  ;;  %v430_v22 = vmul.u32 8, %v992_v5  ;;  %v792_v5 = vmov 0  }
  0x62   : > { %s971_s12 = sld [smem:[#allocation7 + %s281_s11]]  ;;  %s283_s15 = sadd.s32 4, %s961_s29 }
  0x63   : > { %s980_s23 = sld [smem:[#allocation7 + %s283_s15]]  ;;  %s285_s13 = sadd.s32 5, %s961_s29  ;;  %v1025_v20 = vstv %s963_s24  ;;  %v431_v30 = vmul.u32 8, %v1013_v14 }
  0x64   : > { %s989_s16 = sld [smem:[#allocation7 + %s285_s13]]  ;;  %s287_s17 = sadd.s32 6, %s961_s29 }
  0x65   : > { %s994_s2 = sld [smem:[#allocation7 + %s287_s17]]  ;;  %s289_s27 = sadd.s32 7, %s961_s29  ;;  %v312_v6 = vstv %s276_s6 }
  0x66   : > { %s997_s30 = sld [smem:[#allocation7 + %s289_s27]]  ;;  %s291_s8 = sadd.s32 8, %s961_s29  ;;  %v313_v7 = vmul.f32 %v312_v6, %v975_v1  ;;  %v314_v8 = vmul.f32 %v312_v6, %v978_v2  ;;  %v315_v9 = vstv %s278_s7 }
  0x67   : > { %s1002_s26 = sld [smem:[#allocation7 + %s291_s8]]  ;;  %s293_s25 = sadd.s32 9, %s961_s29  ;;  %v316_v10 = vmul.f32 %v315_v9, %v984_v3  ;;  %v317_v11 = vmul.f32 %v315_v9, %v987_v4  ;;  %v320_v12 = vstv %s968_s10 }
  0x68   : > { %s1007_s6 = sld [smem:[#allocation7 + %s293_s25]]  ;;  %s295_s9 = sadd.s32 10, %s961_s29  ;;  %v323_v13 = vstv %s971_s12 }
  0x69   : > { %s1015_s7 = sld [smem:[#allocation7 + %s295_s9]]  ;;  %s297_s11 = sadd.s32 11, %s961_s29  ;;  %v318_v15 = vadd.f32 %v316_v10, %v313_v7  ;;  %v319_v16 = vadd.f32 %v317_v11, %v314_v8  ;;  %v324_v17 = vmul.f32 %v323_v13, %v975_v1  ;;  %v325_v18 = vmul.f32 %v323_v13, %v978_v2 }
  0x6a   : > { %s1020_s15 = sld [smem:[#allocation7 + %s297_s11]]  ;;  %s299_s10 = sadd.s32 12, %s961_s29  ;;  %v326_v19 = vstv %s980_s23  ;;  %v331_v27 = vstv %s989_s16 }
  0x6b   : > { %s1030_s12 = sld [smem:[#allocation7 + %s299_s10]]  ;;  %s301_s13 = sadd.s32 13, %s961_s29  ;;  %v321_v23 = vadd.f32 %v320_v12, %v318_v15  ;;  %v322_v24 = vadd.f32 %v320_v12, %v319_v16  ;;  %v327_v25 = vmul.f32 %v326_v19, %v984_v3  ;;  %v328_v26 = vmul.f32 %v326_v19, %v987_v4 }
  0x6c   : > { %s1035_s23 = sld [smem:[#allocation7 + %s301_s13]]  ;;  %s303_s24 = sadd.s32 14, %s961_s29  ;;  %v334_v28 = vstv %s994_s2  ;;  %v337_v29 = vstv %s997_s30 }
  0x6d   : > { %s305_s17 = sadd.s32 15, %s961_s29  ;;  %v329_v32 = vadd.f32 %v327_v25, %v324_v17  ;;  %v330_v33 = vadd.f32 %v328_v26, %v325_v18  ;;  %v335_v34 = vmul.f32 %v334_v28, %v975_v1  ;;  %v336_v35 = vmul.f32 %v334_v28, %v978_v2  ;;  %s1047_s27 = sld [smem:[#allocation7 + %s303_s24]] }
  0x6e   : > { %s307_s8 = sadd.s32 16, %s961_s29  ;;  %v338_v37 = vmul.f32 %v337_v29, %v984_v3  ;;  %v339_v38 = vmul.f32 %v337_v29, %v987_v4  ;;  %v342_v39 = vstv %s1002_s26  ;;  %v345_v40 = vmul.f32 %v321_v23, %v271_v31  ;;  %s1053_s16 = sld [smem:[#allocation7 + %s305_s17]] }
  0x6f   : > { %s309_s2 = sadd.s32 17, %s961_s29  ;;  %v332_v41 = vadd.f32 %v331_v27, %v329_v32  ;;  %v333_v42 = vadd.f32 %v331_v27, %v330_v33  ;;  %v346_v43 = vmul.f32 %v322_v24, %v272_v36  ;;  %v353_v44 = vmul.f32 %v321_v23, %v321_v23  ;;  %s1059_s30 = sld [smem:[#allocation7 + %s307_s8]] }
  0x70   : > { %v340_v47 = vadd.f32 %v338_v37, %v335_v34  ;;  %v341_v48 = vadd.f32 %v339_v38, %v336_v35  ;;  %v354_v49 = vmul.f32 %v322_v24, %v322_v24  ;;  %v359_v50 = vstv %s1007_s6  ;;  %s1061_s26 = sld [smem:[#allocation7 + %s309_s2]] }
  0x71   : > { %v347_v51 = vmul.f32 %v332_v41, %v273_v45  ;;  %v348_v52 = vmul.f32 %v333_v42, %v274_v46  ;;  %v355_v53 = vmul.f32 %v332_v41, %v332_v41  ;;  %v356_v54 = vmul.f32 %v333_v42, %v333_v42  ;;  %s1072_s28 = sld [smem:[#allocation4 + %s777_s20]]  ;;  %s1139_s20 = smov (!%p257_p4, %s777_s20), 5 }
  0x72   : > { %v343_v55 = vadd.f32 %v342_v39, %v340_v47  ;;  %v344_v56 = vadd.f32 %v342_v39, %v341_v48  ;;  %v360_v57 = vmul.f32 %v359_v50, %v271_v31  ;;  %v361_v58 = vmul.f32 %v359_v50, %v272_v36  ;;  %s584_s29 = sshll.u32 %s1139_s20, 3 }
  0x73   : > { %v349_v59 = vadd.f32 %v347_v51, %v345_v40  ;;  %v350_v60 = vadd.f32 %v348_v52, %v346_v43  ;;  %v357_v61 = vadd.f32 %v355_v53, %v353_v44  ;;  %v358_v62 = vadd.f32 %v356_v54, %v354_v49  ;;  %s260_s9 = scalar_lea.vmem %s1116_s4, %s584_s29 }
  0x74   : > { %v362_v63 = vstv %s1015_s7  ;;  %v367_v0 = vstv %s1020_s15  ;;  %v370_v6 = vstv %s1030_s12  ;;  %v373_v7 = vstv %s1035_s23 }
  0x75   : > { %v351_v8 = vadd.f32 %v349_v59, %v343_v55  ;;  %v352_v9 = vadd.f32 %v350_v60, %v344_v56  ;;  %v363_v10 = vmul.f32 %v362_v63, %v273_v45  ;;  %v364_v11 = vmul.f32 %v362_v63, %v274_v46 }
  0x76   : > { %v371_v12 = vmul.f32 %v370_v6, %v271_v31  ;;  %v372_v13 = vmul.f32 %v370_v6, %v272_v36  ;;  %v374_v15 = vmul.f32 %v373_v7, %v273_v45  ;;  %v375_v16 = vmul.f32 %v373_v7, %v274_v46 }
  0x77   : > { %v365_v17 = vadd.f32 %v363_v10, %v360_v57  ;;  %v366_v18 = vadd.f32 %v364_v11, %v361_v58  ;;  %v378_v19 = vstv %s1047_s27  ;;  %v381_v23 = vstv %s1053_s16 }
  0x78   : > { %v376_v24 = vadd.f32 %v374_v15, %v371_v12  ;;  %v377_v25 = vadd.f32 %v375_v16, %v372_v13  ;;  %v382_v26 = vmul.f32 %v381_v23, %v271_v31  ;;  %v383_v27 = vmul.f32 %v381_v23, %v272_v36 }
  0x79   : > { %v368_v28 = vadd.f32 %v367_v0, %v365_v17  ;;  %v369_v29 = vadd.f32 %v367_v0, %v366_v18  ;;  %v384_v32 = vstv %s1059_s30  ;;  %v389_v33 = vstv %s1061_s26 }
  0x7a   : > { %v379_v34 = vadd.f32 %v378_v19, %v376_v24  ;;  %v380_v35 = vadd.f32 %v378_v19, %v377_v25  ;;  %v385_v37 = vmul.f32 %v384_v32, %v273_v45  ;;  %v386_v38 = vmul.f32 %v384_v32, %v274_v46 }
  0x7b   : > { %v392_v39 = vmul.f32 %v368_v28, %v975_v1  ;;  %v393_v40 = vmul.f32 %v369_v29, %v978_v2  ;;  %v400_v41 = vmul.f32 %v368_v28, %v368_v28  ;;  %v401_v42 = vmul.f32 %v369_v29, %v369_v29 }
  0x7c   : > { %v387_v43 = vadd.f32 %v385_v37, %v382_v26  ;;  %v388_v44 = vadd.f32 %v386_v38, %v383_v27  ;;  %v394_v31 = vmul.f32 %v379_v34, %v984_v3  ;;  %v395_v36 = vmul.f32 %v380_v35, %v987_v4 }
  0x7d   : > { %v402_v47 = vmul.f32 %v379_v34, %v379_v34  ;;  %v403_v48 = vmul.f32 %v380_v35, %v380_v35  ;;  %v406_v49 = vmul.f32 %v351_v8, %v351_v8  ;;  %v407_v50 = vmul.f32 %v352_v9, %v352_v9 }
  0x7e   : > { %v390_v51 = vadd.f32 %v389_v33, %v387_v43  ;;  %v391_v45 = vadd.f32 %v389_v33, %v388_v44  ;;  %v396_v46 = vadd.f32 %v394_v31, %v392_v39  ;;  %v397_v52 = vadd.f32 %v395_v36, %v393_v40 }
  0x7f   : > { %v404_v1 = vadd.f32 %v402_v47, %v400_v41  ;;  %v405_v53 = vadd.f32 %v403_v48, %v401_v42  ;;  %v409_v2 = vmul.f32 %v1025_v20, %v357_v61  ;;  %v410_v54 = vmul.f32 %v1025_v20, %v358_v62 }
  0x80   : > { %v398_v55 = vadd.f32 %v396_v46, %v390_v51  ;;  %v399_v56 = vadd.f32 %v397_v52, %v391_v45  ;;  %v432_v3 = vadd.s32 %v430_v22, %v1027_v21  ;;  %v433_v58 = vadd.s32 %v431_v30, %v1027_v21 }
  0x81   : > { %v415_v4 = vmul.f32 %v1025_v20, %v404_v1  ;;  %v416_v57 = vmul.f32 %v1025_v20, %v405_v53  ;;  %v435_v59 = vstv %s1072_s28  ;;  %vm411_vm0 = vcmp.lt.f32.partialorder %v406_v49, %v409_v2 }
  0x82   : > { %v413_v60 = vmul.f32 %v398_v55, %v398_v55  ;;  %v414_v61 = vmul.f32 %v399_v56, %v399_v56  ;;  %vm412_vm1 = vcmp.lt.f32.partialorder %v407_v50, %v410_v54  ;;  %vm436_vm4 = vcmp.lt.s32.totalorder %v432_v3, %v435_v59 }
  0x83   : > { %vm437_vm6 = vcmp.lt.s32.totalorder %v433_v58, %v435_v59 }
  0x84   : > { %vm417_vm2 = vcmp.lt.f32.partialorder %v413_v60, %v415_v4  ;;  %vm418_vm3 = vcmp.lt.f32.partialorder %v414_v61, %v416_v57 }
  0x85   : > { %vm419_vm5 = vmand %vm411_vm0, %vm417_vm2 }
  0x86   : > { %vm420_vm7 = vmand %vm412_vm1, %vm418_vm3 }
  0x87   : > { %vm440_vm8 = vmand %vm419_vm5, %vm436_vm4 }
  0x88   : > { %vm441_vm9 = vmand %vm420_vm7, %vm437_vm6  ;;  %v442_v20 = vsel %vm440_vm8, 1, %v792_v5 }
  0x89   : > { %v443_v22 = vsel %vm441_vm9, 1, %v792_v5 }
  0x8a   : > { %v453_v14 = vadd.s32 %v443_v22, %v442_v20 }
  0x8c   : > { %v455_v21 = vshrl.u32 %v453_v14, 16  ;;  %v454_v30 = vand.u32 65535, %v453_v14 }
  0x8e   : > { %v457_v62 = vcvt.s32.f32 %v455_v21  ;;  %v456_v63 = vcvt.s32.f32 %v454_v30 }
  0x90   : > { %460 = vadd.xlane.f32.xlu0 %v457_v62 }
  0x94   : > { %458 = vadd.xlane.f32.xlu0 %v456_v63 }
 0x11d   : > { %v461_v0 = vpop.xlane.xlu0 %460 }
 0x11e   : > { %v463_v6 = vcvt.f32.s32 %v461_v0 }
 0x120   : > { %v464_v8 = vshll.u32 %v463_v6, 16 }
 0x121   : > { %v459_v7 = vpop.xlane.xlu0 %458 }
 0x122   : > { %v462_v9 = vcvt.f32.s32 %v459_v7 }
 0x124   : > { %v465_v10 = vadd.s32 %v464_v8, %v462_v9 }
 0x126   : > { %v466_v11 = vrot.slane %v465_v10, 4 }
 0x128   : > { %v467_v12 = vadd.s32 %v466_v11, %v465_v10 }
 0x12a   : > { %v468_v13 = vrot.slane %v467_v12, 2 }
 0x12c   : > { %v469_v15 = vadd.s32 %v468_v13, %v467_v12 }
 0x12e   : > { %v470_v16 = vrot.slane %v469_v15, 1 }
 0x130   : > { %v471_v17 = vadd.s32 %v470_v16, %v469_v15 }
 0x132   : > { %472 = vst [vmem:[%s260_s9] sm:$0xff] %v471_v17 }
 0x133 PF: > { %s20_s22 = sadd.s32 1, %s785_s22   ;;  %s1131_s17 = smov %s769_s18 }
 0x134   : > { %p17_p9 = scmp.ge.s32.totalorder %s20_s22, 8   ;;  %s1132_s18 = smov %s773_s19 }
 0x135   : > { %s1133_s19 = smov %s913_s5  ;;  %s1134_s20 = smov %s781_s21 }
 0x136   : > { %s1135_s21 = smov %s1137_s14  ;;  %19 = sbr.rel (!%p17_p9) target bundleno = 8 (0x8), region = 93 }
 0x13d   :  { %492 = vsyncpa [#allocation5], 1 }
 0x13e   :  { %494 = vsyncpa [#allocation5 + $0x1], 1 }
 0x13f   :  { %495 = vsyncpa [#allocation6], 1 }
 0x140   :  { %497 = vsyncpa [#allocation6 + $0x1], 1 }
 0x141   :  { %498 = vsyncpa [#allocation8], 1 }

</bundles_post_ra>
